<compile_context>
chip_gen: v6e
topology: v6e:2x2x1
jax: 0.10.0
libtpu: 0.0.40
codegen_flags: <defaults>
</compile_context>

<pallas_src>
import math

import jax
import jax.numpy as jnp
from jax.experimental import pallas as pl
from jax.experimental.pallas import tpu as pltpu

_LANES = 128
_SUBLANES = 8


def _drop_path_kernel(scale_ref, x_ref, o_ref):
    # scale_ref: (bb, 1[, 1]) f32 per-sample scale (0.0 or 1/keep_prob).
    # x_ref / o_ref: (bb, tr, 128) or (bb, tile_f) tile of the (grouped) samples.
    o_ref[...] = (x_ref[...].astype(jnp.float32) * scale_ref[...]).astype(o_ref.dtype)


def _round_down(a, b):
    return (a // b) * b


def drop_path_pallas(x, drop_prob, key, training=True, *,
                     block_bytes=4 * 1024 * 1024):
    """Stochastic depth per sample. x: (B, ...); mask broadcast over non-batch dims."""
    if (drop_prob is None) or (drop_prob == 0.0) or (not training):
        return x
    keep_prob = 1.0 - float(drop_prob)
    if keep_prob <= 0.0:                      # drop everything; avoid 0 * inf NaN
        return jnp.zeros_like(x)

    orig_shape = x.shape
    B = orig_shape[0]
    F = math.prod(orig_shape[1:]) if len(orig_shape) > 1 else 1
    itemsize = jnp.dtype(x.dtype).itemsize

    # Per-sample Bernoulli(keep_prob) mask, binarized exactly like the torch
    # reference, folded with 1/keep_prob into a single f32 per-sample scale.
    u = jax.random.uniform(key, (B,), dtype=jnp.float32)
    scale = jnp.floor(keep_prob + u) * jnp.float32(1.0 / keep_prob)   # (B,) f32

    if F % _LANES == 0:
        # Lane-dense (B, rows, 128) view -- a free reshape, no pad / slice.
        rows = F // _LANES
        x_view = x.reshape(B, rows, _LANES)
        scale_view = scale.reshape(B, 1, 1)
        sample_bytes = rows * _LANES * itemsize
        if sample_bytes <= block_bytes:
            bb = max(1, min(B, block_bytes // sample_bytes))  # samples per block
            tr = rows                                         # whole sample
        else:
            bb = 1
            tr = max(_SUBLANES,
                     _round_down(block_bytes // (_LANES * itemsize), _SUBLANES))
        grid = (pl.cdiv(B, bb), pl.cdiv(rows, tr))
        in_specs = [
            pl.BlockSpec((bb, 1, 1), lambda i, j: (i, 0, 0)),        # scale
            pl.BlockSpec((bb, tr, _LANES), lambda i, j: (i, j, 0)),  # x
        ]
        out_spec = pl.BlockSpec((bb, tr, _LANES), lambda i, j: (i, j, 0))
        out_shape = jax.ShapeDtypeStruct((B, rows, _LANES), x.dtype)
    else:
        # F not lane-aligned: block the raw (B, F) view.  The sublane dim (bb)
        # must be a multiple of 8 or the full batch; tile_f a multiple of 128
        # or all of F.  Boundary blocks are ragged (masked stores) -- no pad.
        x_view = x.reshape(B, F)
        scale_view = scale.reshape(B, 1)
        bb = B if B <= _SUBLANES else _SUBLANES
        bb_pad = -(-bb // _SUBLANES) * _SUBLANES      # sublane-padded VMEM rows
        tile_budget = max(_LANES,
                          _round_down(block_bytes // (bb_pad * itemsize), _LANES))
        tile_f = F if tile_budget >= F else tile_budget
        grid = (pl.cdiv(B, bb), pl.cdiv(F, tile_f))
        in_specs = [
            pl.BlockSpec((bb, 1), lambda i, j: (i, 0)),        # scale
            pl.BlockSpec((bb, tile_f), lambda i, j: (i, j)),   # x
        ]
        out_spec = pl.BlockSpec((bb, tile_f), lambda i, j: (i, j))
        out_shape = jax.ShapeDtypeStruct((B, F), x.dtype)

    out = pl.pallas_call(
        _drop_path_kernel,
        out_shape=out_shape,
        grid=grid,
        in_specs=in_specs,
        out_specs=out_spec,
        compiler_params=pltpu.CompilerParams(
            dimension_semantics=("parallel", "parallel"),
            vmem_limit_bytes=32 * 1024 * 1024,
        ),
    )(scale_view, x_view)

    return out.reshape(orig_shape)


if __name__ == "__main__":
    key = jax.random.PRNGKey(0)
    kx, kmask = jax.random.split(key)

    drop_prob = 0.25
    keep_prob = 1.0 - drop_prob

    def ref_drop_path(xa, B):
        # Same uniform draw / binarization as inside drop_path_pallas.
        u = jax.random.uniform(kmask, (B,), dtype=jnp.float32)
        m = jnp.floor(keep_prob + u).reshape((B,) + (1,) * (xa.ndim - 1))
        return (xa.astype(jnp.float32) * (m / keep_prob)).astype(xa.dtype)

    # 1) lane-aligned flattened sample (F = 8*32 = 256, multiple of 128).
    x = jax.random.normal(kx, (2, 8, 32), dtype=jnp.float32)
    out = jax.block_until_ready(drop_path_pallas(x, drop_prob, kmask, training=True))
    assert jnp.allclose(out, ref_drop_path(x, 2), atol=1e-6), "mismatch (aligned f32)"

    # 2) non-lane-aligned flattened sample (F = 7*9 = 63) -> 2-D ragged path.
    x2 = jax.random.normal(kx, (2, 7, 9), dtype=jnp.float32)
    out2 = jax.block_until_ready(drop_path_pallas(x2, drop_prob, kmask, training=True))
    assert jnp.allclose(out2, ref_drop_path(x2, 2), atol=1e-6), "mismatch (unaligned f32)"

    # 3) bf16 input (multiply in f32, cast back on store; <= 1 ulp of bf16).
    xb = jax.random.normal(kx, (2, 8, 32), dtype=jnp.bfloat16)
    outb = jax.block_until_ready(drop_path_pallas(xb, drop_prob, kmask, training=True))
    assert jnp.allclose(outb.astype(jnp.float32),
                        ref_drop_path(xb, 2).astype(jnp.float32),
                        atol=2e-2, rtol=2e-2), "mismatch (bf16)"

    # 4) eval mode is identity; drop_prob == 1.0 is guarded (all zeros, no NaN).
    out_eval = jax.block_until_ready(
        drop_path_pallas(x, drop_prob, kmask, training=False))
    assert jnp.allclose(out_eval, x), "eval mode must be identity"
    out_all = jax.block_until_ready(drop_path_pallas(x, 1.0, kmask, training=True))
    assert jnp.allclose(out_all, jnp.zeros_like(x)), "drop_prob=1.0 must be zeros"

    print("KERNEL_OK")
</pallas_src>

<mosaic_0001>
module attributes {stable_mosaic.version = 11 : i64} {
  func.func @_drop_path_kernel(%arg0: i32, %arg1: i32, %arg2: memref<2x1x1xf32, #tpu.memory_space<vmem>>, %arg3: memref<2x2x128xf32, #tpu.memory_space<vmem>>, %arg4: memref<2x2x128xf32, #tpu.memory_space<vmem>>) attributes {dimension_semantics = [#tpu.dimension_semantics<parallel>, #tpu.dimension_semantics<parallel>], iteration_bounds = array<i64: 1, 1>, scalar_prefetch = 0 : i64, scratch_operands = 0 : i64, tpu.core_type = #tpu.core_type<tc>, window_params = [{transform_indices = @transform_0, window_bounds = array<i64: 2, 1, 1>}, {transform_indices = @transform_1, window_bounds = array<i64: 2, 2, 128>}, {transform_indices = @transform_2, window_bounds = array<i64: 2, 2, 128>}]} {
    %c0 = arith.constant 0 : index
    %c0_0 = arith.constant 0 : index
    %c0_1 = arith.constant 0 : index
    %0 = vector.load %arg3[%c0, %c0_0, %c0_1] : memref<2x2x128xf32, #tpu.memory_space<vmem>>, vector<2x2x128xf32>
    %c0_2 = arith.constant 0 : index
    %c0_3 = arith.constant 0 : index
    %c0_4 = arith.constant 0 : index
    %1 = vector.load %arg2[%c0_2, %c0_3, %c0_4] : memref<2x1x1xf32, #tpu.memory_space<vmem>>, vector<2x1x1xf32>
    %2 = vector.broadcast %1 : vector<2x1x1xf32> to vector<2x2x128xf32>
    %3 = arith.mulf %0, %2 : vector<2x2x128xf32>
    %c0_5 = arith.constant 0 : index
    %c0_6 = arith.constant 0 : index
    %c0_7 = arith.constant 0 : index
    %4 = vector.load %arg4[%c0_5, %c0_6, %c0_7] : memref<2x2x128xf32, #tpu.memory_space<vmem>>, vector<2x2x128xf32>
    tpu.vector_store %arg4[%c0_5, %c0_6, %c0_7], %3 {strides = array<i32>} : memref<2x2x128xf32, #tpu.memory_space<vmem>>, vector<2x2x128xf32>,
    return
  }
  func.func @transform_0(%arg0: i32, %arg1: i32) -> (i32, i32, i32) {
    %c0_i32 = arith.constant 0 : i32
    %c0_i32_0 = arith.constant 0 : i32
    %c0_i32_1 = arith.constant 0 : i32
    return %arg0, %c0_i32, %c0_i32_0 : i32, i32, i32
  }
  func.func @transform_1(%arg0: i32, %arg1: i32) -> (i32, i32, i32) {
    %c0_i32 = arith.constant 0 : i32
    %c0_i32_0 = arith.constant 0 : i32
    return %arg0, %arg1, %c0_i32 : i32, i32, i32
  }
  func.func @transform_2(%arg0: i32, %arg1: i32) -> (i32, i32, i32) {
    %c0_i32 = arith.constant 0 : i32
    %c0_i32_0 = arith.constant 0 : i32
    return %arg0, %arg1, %c0_i32 : i32, i32, i32
  }
}

</mosaic_0001>

<bundles_post_ra>
// kernel: tpu_custom_call.1
= control target key start
LH: loop header
LB: loop body
LE: loop exit
PB: predicated region body
PF: predicated region fallthrough
CT: control target
= control target key end

     0   :  { %v83_v1 = vmov 0   ;;  %s117_s0 = inlined_call_operand.vmem [shape: f32[2,1,1], index: 0, kind: input, shape index: {}]   ;;  %s118_s1 = inlined_call_operand.vmem [shape: f32[2,2,128], index: 1, kind: input, shape index: {}]   ;;  %s119_s2 = inlined_call_operand.hbm [shape: f32[2,2,128], index: 2, kind: output, shape index: {}]  }
   0x1   :  { %v54_v0 = vld [vmem:[%s117_s0] ss:$0 sm:$0xff]  ;;  %60 = vset.pattern.permute.xlu0 %v83_v1 }
   0x2   :  { %7 = vsyncpa [#allocation3], 0  ;;  %27 = vperm.xlu0 %60, %v54_v0   ;;  %v55_v2 = vld [vmem:[%s117_s0 + $0x1] ss:$0 sm:$0xff]  ;;  %s84_s15 = smov [#allocation2]  }
   0x3   :  { %v12_v3 = vld [vmem:[%s118_s1] sm:$0x3]  ;;  %s43_s16 = sshll.u32 %s84_s15, 4  ;;  %v13_v6 = vld [vmem:[%s118_s1 + $0x2] sm:$0x3]  ;;  %s44_s16 = int_to_ptr.vmem [resolvable:$true] %s43_s16 }
   0x4   :  { %s61_s19 = scalar_lea.vmem %s44_s16, 64  ;;  %p66_p1 = scmp.lt.s32.totalorder %s44_s16, %s44_s16 }
   0x5   :  { %p62_p0 = scmp.ne.s32.totalorder %s44_s16, %s61_s19  ;;  %p67_p2 = scmp.lt.s32.totalorder %s61_s19, %s61_s19 }
   0x6   :  { %31 = vperm.xlu0 %60, %v55_v2  }
   0x7   :  { %p68_p3 = por %p67_p2, %p66_p1 }
   0x9   :  { %p69_p4 = pnand %p68_p3, %p62_p0 }
  0x7d   :  { %v28_v4 = vpop.permute.xlu0 %27 }
  0x7e   :  { %v34_v5 = vmul.f32 %v28_v4, %v12_v3 }
  0x80   :  { %36 = vst [vmem:[#allocation2] sm:$0x3] %v34_v5 }
  0x81   :  { %v32_v7 = vpop.permute.xlu0 %31 }
  0x82   :  { %v35_v8 = vmul.f32 %v32_v7, %v13_v6 }
  0x84   :  { %37 = vst [vmem:[#allocation2 + $0x2] sm:$0x3] %v35_v8 }
  0x85   :  { %72 = shalt.err (!%p69_p4)
}
  0x86   :  { %s85_s0 = smov 32   ;;  %s86_s20 = smov 2  }
  0x87   :  { %49 = dma.vmem_to_hbm [thread:$0]  %s44_s16, 64, %s119_s2, [#allocation3], %s85_s0, %s85_s0, %s86_s20  }
  0x88   :  { %81 = dma.done.wait [#allocation3], 64  }
  0x89   :  { %82 = vsyncadd [#allocation3], 4294967232 }
  0x8a   :  { %53 = vsyncpa [#allocation3], 1 }

</bundles_post_ra>
